<compile_context>
chip_gen: v7x
topology: tpu7x:2x2x1
jax: 0.10.0
libtpu: 0.0.40
codegen_flags: <defaults>
</compile_context>

<pallas_src>
import functools

import jax
import jax.numpy as jnp
from jax.experimental import pallas as pl
from jax.experimental.pallas import tpu as pltpu


# ----------------------------------------------------------------------------
# Stage 1: per-batch-tile partial min/max of ln1 = x @ w1 + b1.
# ln1 itself is never written to HBM; stage 2 recomputes it from x.
# ----------------------------------------------------------------------------
def _minmax_kernel(x_ref, w1_ref, b1_ref, mn_ref, mx_ref, *,
                   block_batch, batch, mask_last):
    ln1 = jnp.dot(x_ref[...], w1_ref[...],
                  preferred_element_type=jnp.float32) + b1_ref[...]

    def store(mn, mx):
        # Partial outputs are (8, n_pad) blocks (sublane-aligned); broadcast
        # the (1, n_pad) tile statistic over the 8 sublanes (trivial write).
        mn_ref[...] = jnp.broadcast_to(mn, mn_ref.shape)
        mx_ref[...] = jnp.broadcast_to(mx, mx_ref.shape)

    if mask_last:
        i = pl.program_id(0)
        last = pl.num_programs(0) - 1

        @pl.when(i == last)
        def _():
            # Only the last tile can contain padded batch rows.
            row = i * block_batch + jax.lax.broadcasted_iota(
                jnp.int32, ln1.shape, 0)
            valid = row < batch
            fmax = jnp.float32(jnp.finfo(jnp.float32).max)
            store(jnp.min(jnp.where(valid, ln1, fmax), axis=0, keepdims=True),
                  jnp.max(jnp.where(valid, ln1, -fmax), axis=0, keepdims=True))

        @pl.when(i != last)
        def _():
            store(jnp.min(ln1, axis=0, keepdims=True),
                  jnp.max(ln1, axis=0, keepdims=True))
    else:
        store(jnp.min(ln1, axis=0, keepdims=True),
              jnp.max(ln1, axis=0, keepdims=True))


# ----------------------------------------------------------------------------
# Stage 2: recompute ln1, NormLayer (hoisted stats), per-neuron B-spline,
#          ln2 + ReLU. Spline runs on `chunk`-row sub-tiles so its
#          temporaries stay register-resident.
# ----------------------------------------------------------------------------
def _spline_head_kernel(x_ref, w1_ref, b1_ref, mn_ref, mx_ref, coef_ref,
                        spb_ref, w2_ref, b2_ref, out_ref, sp_ref, u_scratch,
                        *, degree, num_knots, chunk):
    one = jnp.float32(1.0)
    zero = jnp.float32(0.0)

    # Recompute ln1 on the (otherwise idle) MXU: cheaper than the HBM
    # write+read it replaces since input_dim << n_pad.
    ln1 = jnp.dot(x_ref[...], w1_ref[...],
                  preferred_element_type=jnp.float32) + b1_ref[...]

    # NormLayer with hoisted batch statistics; scale folded in-kernel.
    # Work in u = t * (num_knots - 1): extended knots sit at the integers
    # {-degree, ..., num_knots - 1 + degree}; 0 <= u < num_knots - 1.
    inv = one / (mx_ref[...] - mn_ref[...] + jnp.float32(1e-8))
    u_scratch[...] = (ln1 - mn_ref[...]) * (inv * jnp.float32(num_knots - 1))

    coef = coef_ref[...]          # (n_basis, n_pad), tiny, loop-invariant
    spb = spb_ref[...]            # (1, n_pad)
    n1 = num_knots + 2 * degree - 2   # full length of the degree-1 basis list

    def spline(u):
        # Degree-1 uniform-knot bases are hat functions (exact for unit knot
        # spacing) -> Cox-de-Boor levels 0 and 1 are skipped entirely. Only
        # the num_knots hats whose support intersects [0, num_knots-1) are
        # materialized; the rest stay pruned (None).
        basis = [None] * n1
        for c in range(num_knots):
            basis[degree - 1 + c] = jnp.maximum(
                one - jnp.abs(u - jnp.float32(c)), zero)

        def level(p, cur, fuse):
            # One Cox-de-Boor level. Left product prod[j] = L_j * cur[j] is
            # computed once and shared; the right term is cur[j+1] - prod[j+1]
            # (saves one multiply per basis). If `fuse`, the per-neuron
            # coefficient contraction is fused in (final level).
            inv_p = jnp.float32(1.0 / p)

            def prod(j):
                if cur[j] is None:
                    return None
                return ((u - jnp.float32(j - degree)) * inv_p) * cur[j]

            nxt, acc = [], None
            prev = prod(0)
            for i in range(len(cur) - 1):
                nxt_p = prod(i + 1)
                term = prev
                if cur[i + 1] is not None:
                    right = cur[i + 1] - nxt_p
                    term = right if term is None else term + right
                prev = nxt_p
                if not fuse:
                    nxt.append(term)      # keep full-length list (index align)
                elif term is not None:
                    contrib = coef[i:i + 1, :] * term
                    acc = contrib if acc is None else acc + contrib
            return acc if fuse else nxt

        if degree == 1:
            acc = None
            for k in range(n1):
                contrib = coef[k:k + 1, :] * basis[k]
                acc = contrib if acc is None else acc + contrib
        else:
            for p in range(2, degree):
                basis = level(p, basis, fuse=False)
            acc = level(degree, basis, fuse=True)
        return acc + spb

    # Row-chunked spline: each temporary is a (chunk, n_pad) tile (1 vreg for
    # chunk=8, n_pad=128), so the whole recursion stays in registers instead
    # of spilling (tb, n_pad) arrays to VMEM.
    nsteps = sp_ref.shape[0] // chunk

    def body(c, carry):
        off = pl.multiple_of(c * chunk, chunk)
        u = u_scratch[pl.ds(off, chunk), :]
        sp_ref[pl.ds(off, chunk), :] = spline(u)
        return carry

    jax.lax.fori_loop(0, nsteps, body, 0)

    # ln2 + ReLU on the full tile (MXU + VPU).
    # TODO(synk): cast sp_ref / w2 to bf16 here if downstream tolerates it
    #             (halves the dominant sp1out HBM stream).
    out = jnp.dot(sp_ref[...], w2_ref[...],
                  preferred_element_type=jnp.float32) + b2_ref[...]
    out_ref[...] = jnp.maximum(out, zero)


# ----------------------------------------------------------------------------
# Wrapper
# ----------------------------------------------------------------------------
def _round_up(v, m):
    return ((v + m - 1) // m) * m


def _pad2d(a, rows, cols):
    a = jnp.asarray(a, jnp.float32)
    return jnp.pad(a, ((0, rows - a.shape[0]), (0, cols - a.shape[1])))


def _pick_block_batch():
    # 512-row tiles reach ~85% of the streamed HBM roofline on the 128 MiB
    # VMEM parts (v5e/v6e); cap at 256 on 64 MiB-per-TC parts (v7x).
    try:
        vmem = pltpu.get_tpu_info().vmem_capacity_bytes
    except Exception:
        return 256
    return 512 if vmem >= (96 << 20) else 256


def mpsv3_forward(x, params, *, degree, num_knots, block_batch=None,
                  spline_chunk=8, vmem_limit_bytes=None):
    """x: (batch, input_dim) f32. Returns (ln2out, sp1out).

    sp1out mirrors self.inter['basic'] in the PyTorch module.
    """
    assert degree >= 1, "B-spline degree must be >= 1"
    w1, b1, coef, spb, w2, b2 = params
    batch, input_dim = x.shape
    num_neurons = w1.shape[1]
    output_dim = w2.shape[1]
    n_basis = num_knots + degree - 1
    assert coef.shape[0] == n_basis

    if block_batch is None:
        block_batch = _pick_block_batch()

    LANE = 128
    n_pad = _round_up(num_neurons, LANE)       # lane-dense neuron axis
    o_pad = _round_up(output_dim, LANE)        # lane-dense output stores
    tb = min(_round_up(block_batch, 8), _round_up(batch, 8))
    b_pad = _round_up(batch, tb)
    num_tiles = b_pad // tb
    chunk = spline_chunk if (spline_chunk % 8 == 0 and tb % spline_chunk == 0) else 8

    xp = _pad2d(x, b_pad, input_dim)
    w1p = _pad2d(w1, input_dim, n_pad)
    b1p = _pad2d(b1, 1, n_pad)
    coefp = _pad2d(coef, n_basis, n_pad)
    spbp = _pad2d(spb, 1, n_pad)
    w2p = _pad2d(w2, n_pad, o_pad)
    b2p = _pad2d(b2, 1, o_pad)

    def resident(shape):
        return pl.BlockSpec(shape, lambda i: (0, 0))

    # --- stage 1: per-tile partial min/max (parallel grid, no ln1 output) ----
    mn_parts, mx_parts = pl.pallas_call(
        functools.partial(_minmax_kernel, block_batch=tb, batch=batch,
                          mask_last=(b_pad != batch)),
        grid=(num_tiles,),
        in_specs=[
            pl.BlockSpec((tb, input_dim), lambda i: (i, 0)),   # x tile
            resident((input_dim, n_pad)),                      # w1
            resident((1, n_pad)),                              # b1
        ],
        out_specs=(
            pl.BlockSpec((8, n_pad), lambda i: (i, 0)),        # min partials
            pl.BlockSpec((8, n_pad), lambda i: (i, 0)),        # max partials
        ),
        out_shape=(
            jax.ShapeDtypeStruct((num_tiles * 8, n_pad), jnp.float32),
            jax.ShapeDtypeStruct((num_tiles * 8, n_pad), jnp.float32),
        ),
        compiler_params=pltpu.CompilerParams(
            dimension_semantics=("parallel",),   # dual-TC sharding on v7x
            vmem_limit_bytes=vmem_limit_bytes),
    )(xp, w1p, b1p)

    # Tiny (num_tiles -> 1) finish of the batch statistics in plain JAX.
    mn = jnp.min(mn_parts, axis=0, keepdims=True)
    mx = jnp.max(mx_parts, axis=0, keepdims=True)

    # --- stage 2: recompute ln1 + normalize + B-spline + ln2 + ReLU ----------
    out_p, sp_p = pl.pallas_call(
        functools.partial(_spline_head_kernel, degree=degree,
                          num_knots=num_knots, chunk=chunk),
        grid=(num_tiles,),
        in_specs=[
            pl.BlockSpec((tb, input_dim), lambda i: (i, 0)),   # x tile
            resident((input_dim, n_pad)),                      # w1
            resident((1, n_pad)),                              # b1
            resident((1, n_pad)),                              # batch min
            resident((1, n_pad)),                              # batch max
            resident((n_basis, n_pad)),                        # spline coef
            resident((1, n_pad)),                              # spline bias
            resident((n_pad, o_pad)),                          # w2
            resident((1, o_pad)),                              # b2
        ],
        out_specs=(
            pl.BlockSpec((tb, o_pad), lambda i: (i, 0)),       # out tile
            pl.BlockSpec((tb, n_pad), lambda i: (i, 0)),       # sp1out tile
        ),
        out_shape=(
            jax.ShapeDtypeStruct((b_pad, o_pad), jnp.float32),
            jax.ShapeDtypeStruct((b_pad, n_pad), jnp.float32),
        ),
        scratch_shapes=[pltpu.VMEM((tb, n_pad), jnp.float32)],  # u = scaled t
        compiler_params=pltpu.CompilerParams(
            dimension_semantics=("parallel",),   # megacore / dual-TC sharding
            vmem_limit_bytes=vmem_limit_bytes),
    )(xp, w1p, b1p, mn, mx, coefp, spbp, w2p, b2p)

    return out_p[:batch, :output_dim], sp_p[:batch, :num_neurons]


# ----------------------------------------------------------------------------
# Pure-JAX reference (standard formulation, unoptimized) for a sanity check.
# ----------------------------------------------------------------------------
def mpsv3_reference(x, params, *, degree, num_knots):
    w1, b1, coef, spb, w2, b2 = params
    h = 1.0 / (num_knots - 1)
    ext_knots = [-degree * h + i * h for i in range(num_knots + 2 * degree)]
    ln1 = x @ w1 + b1
    mn = jnp.min(ln1, axis=0, keepdims=True)
    mx = jnp.max(ln1, axis=0, keepdims=True)
    t = (ln1 - mn) / (mx - mn + 1e-8)
    basis = [((t >= ext_knots[i]) & (t < ext_knots[i + 1])).astype(jnp.float32)
             for i in range(len(ext_knots) - 1)]
    for p in range(1, degree + 1):
        basis = [
            (t - ext_knots[i]) / (ext_knots[i + p] - ext_knots[i]) * basis[i]
            + (ext_knots[i + p + 1] - t)
            / (ext_knots[i + p + 1] - ext_knots[i + 1]) * basis[i + 1]
            for i in range(len(basis) - 1)
        ]
    sp = spb + sum(coef[k:k + 1, :] * basis[k] for k in range(len(basis)))
    return jnp.maximum(sp @ w2 + b2, 0.0), sp


if __name__ == "__main__":
    # Small shapes consistent with the module's forward (x is (batch, input_dim)).
    # batch is intentionally not a multiple of the tile to exercise the
    # masked last tile and the parallel partial min/max reduction.
    batch, input_dim = 200, 16
    num_neurons, output_dim = 32, 8
    degree, num_knots = 3, 8
    n_basis = num_knots + degree - 1

    key = jax.random.PRNGKey(0)
    k_x, k_w1, k_b1, k_c, k_sb, k_w2, k_b2 = jax.random.split(key, 7)

    x = jax.random.normal(k_x, (batch, input_dim), jnp.float32)

    lim1 = 1.0 / (input_dim ** 0.5)
    lim2 = 1.0 / (num_neurons ** 0.5)
    w1 = jax.random.uniform(k_w1, (input_dim, num_neurons), jnp.float32, -lim1, lim1)
    b1 = jax.random.uniform(k_b1, (1, num_neurons), jnp.float32, -lim1, lim1)
    coef = 0.1 * jax.random.normal(k_c, (n_basis, num_neurons), jnp.float32)
    spb = 0.1 * jax.random.normal(k_sb, (1, num_neurons), jnp.float32)
    w2 = jax.random.uniform(k_w2, (num_neurons, output_dim), jnp.float32, -lim2, lim2)
    b2 = jax.random.uniform(k_b2, (1, output_dim), jnp.float32, -lim2, lim2)

    params = (w1, b1, coef, spb, w2, b2)

    ref_out, ref_sp = mpsv3_reference(x, params, degree=degree, num_knots=num_knots)

    # Multi-tile path: 4 batch tiles, masked last tile, parallel partials.
    out, sp1out = mpsv3_forward(x, params, degree=degree, num_knots=num_knots,
                                block_batch=64)
    out = jax.block_until_ready(out)
    sp1out = jax.block_until_ready(sp1out)
    assert out.shape == (batch, output_dim)
    assert sp1out.shape == (batch, num_neurons)
    assert jnp.allclose(out, ref_out, atol=5e-5, rtol=5e-5), \
        float(jnp.max(jnp.abs(out - ref_out)))
    assert jnp.allclose(sp1out, ref_sp, atol=5e-5, rtol=5e-5), \
        float(jnp.max(jnp.abs(sp1out - ref_sp)))

    # Auto-tiled path (per-generation block_batch default, single tile here).
    out2, sp2 = mpsv3_forward(x, params, degree=degree, num_knots=num_knots)
    out2 = jax.block_until_ready(out2)
    sp2 = jax.block_until_ready(sp2)
    assert jnp.allclose(out2, ref_out, atol=5e-5, rtol=5e-5), \
        float(jnp.max(jnp.abs(out2 - ref_out)))
    assert jnp.allclose(sp2, ref_sp, atol=5e-5, rtol=5e-5), \
        float(jnp.max(jnp.abs(sp2 - ref_sp)))

    print("KERNEL_OK")
</pallas_src>

<mosaic_0001>
module attributes {stable_mosaic.version = 11 : i64} {
  func.func @_minmax_kernel(%arg0: i32, %arg1: memref<64x16xf32, #tpu.memory_space<vmem>>, %arg2: memref<16x128xf32, #tpu.memory_space<vmem>>, %arg3: memref<1x128xf32, #tpu.memory_space<vmem>>, %arg4: memref<8x128xf32, #tpu.memory_space<vmem>>, %arg5: memref<8x128xf32, #tpu.memory_space<vmem>>) attributes {dimension_semantics = [#tpu.dimension_semantics<parallel>], iteration_bounds = array<i64: 4>, scalar_prefetch = 0 : i64, scratch_operands = 0 : i64, tpu.core_type = #tpu.core_type<tc>, window_params = [{transform_indices = @transform_0, window_bounds = array<i64: 64, 16>}, {pipeline_mode = #tpu.pipeline_mode<synchronous>, transform_indices = @transform_1, window_bounds = array<i64: 16, 128>}, {pipeline_mode = #tpu.pipeline_mode<synchronous>, transform_indices = @transform_2, window_bounds = array<i64: 1, 128>}, {transform_indices = @transform_3, window_bounds = array<i64: 8, 128>}, {transform_indices = @transform_4, window_bounds = array<i64: 8, 128>}]} {
    %c0 = arith.constant 0 : index
    %c0_0 = arith.constant 0 : index
    %0 = vector.load %arg1[%c0, %c0_0] : memref<64x16xf32, #tpu.memory_space<vmem>>, vector<64x16xf32>
    %c0_1 = arith.constant 0 : index
    %c0_2 = arith.constant 0 : index
    %1 = vector.load %arg2[%c0_1, %c0_2] : memref<16x128xf32, #tpu.memory_space<vmem>>, vector<16x128xf32>
    %cst = arith.constant dense<0.000000e+00> : vector<64x128xf32>
    %2 = tpu.matmul %0, %1, %cst {dimension_numbers = #tpu.dot_dimension_numbers<[1], [0], [0], [1], [0, 0, 1, 1], [], []>} : vector<64x16xf32>, vector<16x128xf32>, vector<64x128xf32> -> vector<64x128xf32>
    %c0_3 = arith.constant 0 : index
    %c0_4 = arith.constant 0 : index
    %3 = vector.load %arg3[%c0_3, %c0_4] : memref<1x128xf32, #tpu.memory_space<vmem>>, vector<1x128xf32>
    %4 = vector.broadcast %3 : vector<1x128xf32> to vector<64x128xf32>
    %5 = arith.addf %2, %4 : vector<64x128xf32>
    %c3_i32 = arith.constant 3 : i32
    %6 = arith.cmpi eq, %arg0, %c3_i32 : i32
    %7 = arith.extui %6 : i1 to i32
    %c0_i32 = arith.constant 0 : i32
    %8 = arith.cmpi ne, %7, %c0_i32 : i32
    scf.if %8 {
      %c64_i32 = arith.constant 64 : i32
      %12 = arith.muli %arg0, %c64_i32 : i32
      %13 = tpu.iota {dimensions = array<i32: 0>} : vector<64x128xi32>
      %14 = vector.broadcast %12 : i32 to vector<64x128xi32>
      %15 = arith.addi %14, %13 : vector<64x128xi32>
      %c200_i32 = arith.constant 200 : i32
      %16 = vector.broadcast %c200_i32 : i32 to vector<64x128xi32>
      %17 = arith.cmpi slt, %15, %16 : vector<64x128xi32>
      %cst_7 = arith.constant 3.40282347E+38 : f32
      %18 = vector.broadcast %cst_7 : f32 to vector<64x128xf32>
      %19 = arith.select %17, %5, %18 : vector<64x128xi1>, vector<64x128xf32>
      %cst_8 = arith.constant dense<0x7F800000> : vector<128xf32>
      %20 = vector.multi_reduction <minimumf>, %19, %cst_8 [0] : vector<64x128xf32> to vector<128xf32>
      %21 = vector.shape_cast %20 : vector<128xf32> to vector<1x128xf32>
      %cst_9 = arith.constant 0.000000e+00 : f32
      %cst_10 = arith.constant 3.40282347E+38 : f32
      %22 = arith.subf %cst_9, %cst_10 : f32
      %23 = vector.broadcast %22 : f32 to vector<64x128xf32>
      %24 = arith.select %17, %5, %23 : vector<64x128xi1>, vector<64x128xf32>
      %cst_11 = arith.constant dense<0xFF800000> : vector<128xf32>
      %25 = vector.multi_reduction <maximumf>, %24, %cst_11 [0] : vector<64x128xf32> to vector<128xf32>
      %26 = vector.shape_cast %25 : vector<128xf32> to vector<1x128xf32>
      %27 = vector.shape_cast %21 : vector<1x128xf32> to vector<1x128xf32>
      %28 = vector.broadcast %27 : vector<1x128xf32> to vector<8x128xf32>
      %c0_12 = arith.constant 0 : index
      %c0_13 = arith.constant 0 : index
      %29 = vector.load %arg4[%c0_12, %c0_13] : memref<8x128xf32, #tpu.memory_space<vmem>>, vector<8x128xf32>
      tpu.vector_store %arg4[%c0_12, %c0_13], %28 {strides = array<i32>} : memref<8x128xf32, #tpu.memory_space<vmem>>, vector<8x128xf32>,
      %30 = vector.shape_cast %26 : vector<1x128xf32> to vector<1x128xf32>
      %31 = vector.broadcast %30 : vector<1x128xf32> to vector<8x128xf32>
      %c0_14 = arith.constant 0 : index
      %c0_15 = arith.constant 0 : index
      %32 = vector.load %arg5[%c0_14, %c0_15] : memref<8x128xf32, #tpu.memory_space<vmem>>, vector<8x128xf32>
      tpu.vector_store %arg5[%c0_14, %c0_15], %31 {strides = array<i32>} : memref<8x128xf32, #tpu.memory_space<vmem>>, vector<8x128xf32>,
    } else {
    }
    %c3_i32_5 = arith.constant 3 : i32
    %9 = arith.cmpi ne, %arg0, %c3_i32_5 : i32
    %10 = arith.extui %9 : i1 to i32
    %c0_i32_6 = arith.constant 0 : i32
    %11 = arith.cmpi ne, %10, %c0_i32_6 : i32
    scf.if %11 {
      %cst_7 = arith.constant dense<0x7F800000> : vector<128xf32>
      %12 = vector.multi_reduction <minimumf>, %5, %cst_7 [0] : vector<64x128xf32> to vector<128xf32>
      %13 = vector.shape_cast %12 : vector<128xf32> to vector<1x128xf32>
      %cst_8 = arith.constant dense<0xFF800000> : vector<128xf32>
      %14 = vector.multi_reduction <maximumf>, %5, %cst_8 [0] : vector<64x128xf32> to vector<128xf32>
      %15 = vector.shape_cast %14 : vector<128xf32> to vector<1x128xf32>
      %16 = vector.shape_cast %13 : vector<1x128xf32> to vector<1x128xf32>
      %17 = vector.broadcast %16 : vector<1x128xf32> to vector<8x128xf32>
      %c0_9 = arith.constant 0 : index
      %c0_10 = arith.constant 0 : index
      %18 = vector.load %arg4[%c0_9, %c0_10] : memref<8x128xf32, #tpu.memory_space<vmem>>, vector<8x128xf32>
      tpu.vector_store %arg4[%c0_9, %c0_10], %17 {strides = array<i32>} : memref<8x128xf32, #tpu.memory_space<vmem>>, vector<8x128xf32>,
      %19 = vector.shape_cast %15 : vector<1x128xf32> to vector<1x128xf32>
      %20 = vector.broadcast %19 : vector<1x128xf32> to vector<8x128xf32>
      %c0_11 = arith.constant 0 : index
      %c0_12 = arith.constant 0 : index
      %21 = vector.load %arg5[%c0_11, %c0_12] : memref<8x128xf32, #tpu.memory_space<vmem>>, vector<8x128xf32>
      tpu.vector_store %arg5[%c0_11, %c0_12], %20 {strides = array<i32>} : memref<8x128xf32, #tpu.memory_space<vmem>>, vector<8x128xf32>,
    } else {
    }
    return
  }
  func.func @transform_0(%arg0: i32) -> (i32, i32) {
    %c0_i32 = arith.constant 0 : i32
    %c0_i32_0 = arith.constant 0 : i32
    return %arg0, %c0_i32 : i32, i32
  }
  func.func @transform_1(%arg0: i32) -> (i32, i32) {
    %c0_i32 = arith.constant 0 : i32
    %c0_i32_0 = arith.constant 0 : i32
    %c0_i32_1 = arith.constant 0 : i32
    return %c0_i32, %c0_i32_0 : i32, i32
  }
  func.func @transform_2(%arg0: i32) -> (i32, i32) {
    %c0_i32 = arith.constant 0 : i32
    %c0_i32_0 = arith.constant 0 : i32
    %c0_i32_1 = arith.constant 0 : i32
    return %c0_i32, %c0_i32_0 : i32, i32
  }
  func.func @transform_3(%arg0: i32) -> (i32, i32) {
    %c0_i32 = arith.constant 0 : i32
    %c0_i32_0 = arith.constant 0 : i32
    return %arg0, %c0_i32 : i32, i32
  }
  func.func @transform_4(%arg0: i32) -> (i32, i32) {
    %c0_i32 = arith.constant 0 : i32
    %c0_i32_0 = arith.constant 0 : i32
    return %arg0, %c0_i32 : i32, i32
  }
}

</mosaic_0001>

<bundles_post_ra>
// kernel: tpu_custom_call.1
= control target key start
LH: loop header
LB: loop body
LE: loop exit
PB: predicated region body
PF: predicated region fallthrough
CT: control target
= control target key end

     0   :  { %10 = vsyncpa [#allocation3], 0  ;;  %s1036_s0 = inlined_call_operand.vmem [shape: f32[256,16], index: 0, kind: input, shape index: {}]   ;;  %s1037_s1 = inlined_call_operand.vmem [shape: f32[16,128], index: 1, kind: input, shape index: {}]   ;;  %s1038_s2 = inlined_call_operand.vmem [shape: f32[1,128], index: 2, kind: input, shape index: {}]   ;;  %s1039_s3 = inlined_call_operand.hbm [shape: f32[32,128], index: 3, kind: output, shape index: {0}]   ;;  %s1040_s4 = inlined_call_operand.hbm [shape: f32[32,128], index: 4, kind: output, shape index: {1}]  }
   0x1   :  { %12 = vsyncpa [#allocation3 + $0x1], 0 }
   0x2   :  { %13 = vsyncpa [#allocation5], 0 }
   0x3   :  { %15 = vsyncpa [#allocation5 + $0x1], 0  ;;  %s811_s15 = smov 0   ;;  %s813_s16 = smov 0  }
   0x4   :  { %s815_s17 = smov 0   ;;  %s817_s18 = smov 0  }
   0x5 LB: > { %s832_s19 = sadd.s32 4294967295, %s782_s18   ;;  %s586_s20 = sadd.s32 4294967294, %s782_s18   ;;  %s782_s18 = sphi %s817_s18, %s1046_s18   ;;  %s778_s17 = sphi %s815_s17, %s1045_s17   ;;  %s774_s16 = sphi %s813_s16, %s1044_s16   ;;  %s770_s15 = sphi %s811_s15, %s1043_s15  }
   0x6   : > { %s836_s21 = sadd.s32 1, %s782_s18   ;;  %s96_s22 = sadd.s32 1, %s778_s17 }
   0x7   : > { %s93_s23 = ssub.s32 %s782_s18, %s836_s21  ;;  %p106_p0 = scmp.ne.s32.totalorder %s778_s17, %s774_s16 }
   0x8   : > { %p94_p1 = scmp.eq.s32.totalorder %s93_s23, 0  ;;  %p107_p2 = scmp.eq.s32.totalorder %s832_s19, 3 }
   0x9   : > { %p112_p3 = scmp.ne.s32.totalorder %s774_s16, %s770_s15  ;;  %p113_p4 = scmp.eq.s32.totalorder %s586_s20, 3 }
   0xa   : > { %s847_s24 = scalar_select %p94_p1, %s778_s17, %s96_s22  }
   0xb   : > { %p851_p5 = por %p107_p2, %p106_p0  ;;  %p855_p6 = por %p113_p4, %p112_p3 }
   0xc   : > { %p589_p7 = scmp.ge.s32.totalorder %s782_s18, 1  ;;  %p172_p8 = scmp.lt.s32.totalorder %s782_s18, 5 }
   0xe   : > { %p173_p9 = pnand %p589_p7, %p172_p8 }
   0xf   : > { %s862_s27 = sand.u32 (!%p173_p9), 1, %s774_s16   ;;  %v217_v0 = vld [vmem:[%s1037_s1] sm:$0xff] (!%p173_p9)  ;;  %v218_v1 = vld [vmem:[%s1037_s1 + $0x8] sm:$0xff] (!%p173_p9)  ;;  %s592_s6 = sshll.u32 (!%p173_p9), %s832_s19, 3  ;;  %vm226_vm0 = vcmask (!%p173_p9), 130048  }
  0x10   : > { %176 = sbr.rel (%p173_p9) target bundleno = 337 (0x151), region = 32  ;;  %s590_s7 = sshll.u32 (!%p173_p9), %s862_s27, 3  ;;  %v638_v2 = vpack.c.bf16 (!%p173_p9), %v218_v1, %v217_v0  ;;  %v594_v11 = vld [vmem:[%s1038_s2] ss:$0 sm:$0xff] (!%p173_p9) }
  0x11   : > { %p204_p10 = scmp.lt.s32.totalorder (!%p173_p9), %s592_s6, 31  ;;  %s904_s14 = scalar_lea.vmem (!%p173_p9), [#allocation2], %s590_s7 }
  0x12   : > { %639 = vmatprep.subr.bf16.mxu0 (!%p173_p9), %v638_v2  ;;  %642 = vmatprep.subr.bf16.mxu1 (!%p173_p9), %v638_v2  ;;  %s908_s20 = scalar_lea.vmem (!%p173_p9), [#allocation4], %s590_s7  ;;  %p603_p11 = scmp.ne.s32.totalorder (!%p173_p9), %s832_s19, 3 }
  0x13   : > { %641 = vmatpush3.bf16.msra.mxu0 (!%p173_p9), %v638_v2  ;;  %643 = vmatpush3.bf16.msra.mxu1 (!%p173_p9), %v638_v2 }
  0x17   : > { %s1048_s6 = smov (!%p204_p10, %s592_s6), 31  ;;  %s604_s22 = sshll.u32 (!%p603_p11), %s832_s19, 6  ;;  %v361_v28 = vlaneseq (!%p603_p11) }
  0x18   : > { %s593_s8 = sshll.u32 %s1048_s6, 3  ;;  %v370_v30 = vstv (!%p603_p11), %s604_s22 }
  0x19   : > { %s207_s11 = scalar_lea.vmem %s1036_s0, %s593_s8  ;;  %v362_v29 = vshrl.u32 (!%p603_p11), %v361_v28, 7 }
  0x1a   : > { %v209_v3 = vld [vmem:[%s207_s11] sm:$0xff]  ;;  %v210_v5 = vld [vmem:[%s207_s11 + $0x8] sm:$0xff]  ;;  %v211_v7 = vld [vmem:[%s207_s11 + $0x10] sm:$0xff] }
  0x1b   : > { %v213_v4 = vld [vmem:[%s207_s11 + $0x20] sm:$0xff]  ;;  %626 = vmatprep.mubr.msk.f32.mxu0 %vm226_vm0, %v209_v3  ;;  %v214_v6 = vld [vmem:[%s207_s11 + $0x28] sm:$0xff]  ;;  %v215_v8 = vld [vmem:[%s207_s11 + $0x30] sm:$0xff]  ;;  %v363_v31 = vadd.s32 (!%p603_p11), 8, %v362_v29  ;;  %v364_v32 = vadd.s32 (!%p603_p11), 16, %v362_v29  ;;  %v365_v33 = vadd.s32 (!%p603_p11), 24, %v362_v29  ;;  %v371_v38 = vadd.s32 (!%p603_p11), %v370_v30, %v362_v29 }
  0x1c   : > { %632 = vmatprep.mubr.msk.f32.mxu1 %vm226_vm0, %v213_v4  ;;  %627 = vmatmul.mubr.msk.f32.vlgmr.msra.gmra.mrb[0].mxu0 %vm226_vm0, %v210_v5  ;;  %v212_v9 = vld [vmem:[%s207_s11 + $0x18] sm:$0xff]  ;;  %v366_v34 = vadd.s32 (!%p603_p11), 32, %v362_v29  ;;  %v367_v35 = vadd.s32 (!%p603_p11), 40, %v362_v29  ;;  %v368_v36 = vadd.s32 (!%p603_p11), 48, %v362_v29  ;;  %v369_v37 = vadd.s32 (!%p603_p11), 56, %v362_v29 }
  0x1d   : > { %633 = vmatmul.mubr.msk.f32.vlgmr.msra.gmra.mrb[0].mxu1 %vm226_vm0, %v214_v6  ;;  %629 = vmatprep.mubr.msk.f32.mxu0 %vm226_vm0, %v211_v7  ;;  %v216_v10 = vld [vmem:[%s207_s11 + $0x38] sm:$0xff]  ;;  %v372_v39 = vadd.s32 (!%p603_p11), %v370_v30, %v363_v31  ;;  %v373_v40 = vadd.s32 (!%p603_p11), %v370_v30, %v364_v32  ;;  %v374_v41 = vadd.s32 (!%p603_p11), %v370_v30, %v365_v33  ;;  %vm379_vm1 = vcmp.lt.s32.totalorder (!%p603_p11), %v371_v38, 200 }
  0x1e   : > { %635 = vmatprep.mubr.msk.f32.mxu1 %vm226_vm0, %v215_v8  ;;  %v375_v42 = vadd.s32 (!%p603_p11), %v370_v30, %v366_v34  ;;  %v376_v43 = vadd.s32 (!%p603_p11), %v370_v30, %v367_v35  ;;  %v377_v44 = vadd.s32 (!%p603_p11), %v370_v30, %v368_v36  ;;  %v378_v45 = vadd.s32 (!%p603_p11), %v370_v30, %v369_v37 }
  0x1f   : > { %vm380_vm2 = vcmp.lt.s32.totalorder (!%p603_p11), %v372_v39, 200  ;;  %vm381_vm3 = vcmp.lt.s32.totalorder (!%p603_p11), %v373_v40, 200  ;;  %vm382_vm4 = vcmp.lt.s32.totalorder (!%p603_p11), %v374_v41, 200 }
  0x20   : > { %630 = vmatmul.mubr.msk.f32.gmra.mrb[2].mxu0 %vm226_vm0, %v212_v9  ;;  %vm383_vm5 = vcmp.lt.s32.totalorder (!%p603_p11), %v375_v42, 200  ;;  %vm384_vm6 = vcmp.lt.s32.totalorder (!%p603_p11), %v376_v43, 200  ;;  %vm385_vm7 = vcmp.lt.s32.totalorder (!%p603_p11), %v377_v44, 200  ;;  %vm386_vm8 = vcmp.lt.s32.totalorder (!%p603_p11), %v378_v45, 200 }
  0x21   : > { %636 = vmatmul.mubr.msk.f32.gmra.mrb[2].mxu1 %vm226_vm0, %v216_v10 }
  0xef   : > { %v628_v12 = vpop.f32.mrb[0].mxu0 }
  0xf0   : > { %v634_v13 = vpop.f32.mrb[0].mxu1  ;;  %v886_v14 = vadd.f32 %v628_v12, %v594_v11  ;;  %v317_v16 = vpop.f32.mrb[1].mxu0  ;;  %359 = sbr.rel (%p603_p11) target bundleno = 269 (0x10d), region = 36 }
  0xf1   : > { %v888_v15 = vadd.f32 %v634_v13, %v594_v11  ;;  %v337_v17 = vpop.f32.mrb[1].mxu1  ;;  %v890_v18 = vadd.f32 %v594_v11, %v317_v16 }
  0xf2   : > { %v892_v19 = vadd.f32 %v594_v11, %v337_v17  ;;  %v388_v47 = vsel (!%p603_p11), %vm380_vm2, %v886_v14, 3.4028235e+38  ;;  %v409_v59 = vsel (!%p603_p11), %vm380_vm2, %v886_v14, -3.4028235e+38 }
  0xf3   : > { %v631_v20 = vpop.f32.mrb[2].mxu0  ;;  %v387_v46 = vsel (!%p603_p11), %vm379_vm1, %v890_v18, 3.4028235e+38  ;;  %v392_v51 = vsel (!%p603_p11), %vm384_vm6, %v888_v15, 3.4028235e+38 }
  0xf4   : > { %v637_v21 = vpop.f32.mrb[2].mxu1  ;;  %v894_v22 = vadd.f32 %v631_v20, %v594_v11  ;;  %v327_v24 = vpop.f32.mrb[3].mxu0  ;;  %v391_v50 = vsel (!%p603_p11), %vm383_vm5, %v892_v19, 3.4028235e+38  ;;  %v396_v55 = vmin.f32 (!%p603_p11), %v388_v47, %v392_v51  ;;  %v408_v58 = vsel (!%p603_p11), %vm379_vm1, %v890_v18, -3.4028235e+38 }
  0xf5   : > { %v896_v23 = vadd.f32 %v637_v21, %v594_v11  ;;  %v347_v25 = vpop.f32.mrb[3].mxu1  ;;  %v898_v26 = vadd.f32 %v594_v11, %v327_v24  ;;  %v395_v54 = vmin.f32 (!%p603_p11), %v387_v46, %v391_v50  ;;  %v412_v63 = vsel (!%p603_p11), %vm383_vm5, %v892_v19, -3.4028235e+38 }
  0xf6   : > { %v900_v27 = vadd.f32 %v594_v11, %v347_v25  ;;  %v390_v49 = vsel (!%p603_p11), %vm382_vm4, %v894_v22, 3.4028235e+38  ;;  %v411_v62 = vsel (!%p603_p11), %vm382_vm4, %v894_v22, -3.4028235e+38  ;;  %v413_v0 = vsel (!%p603_p11), %vm384_vm6, %v888_v15, -3.4028235e+38 }
  0xf7   : > { %v389_v48 = vsel %vm381_vm3, %v898_v26, 3.4028235e+38  ;;  %v394_v53 = vsel %vm386_vm8, %v896_v23, 3.4028235e+38  ;;  %v410_v60 = vsel %vm381_vm3, %v898_v26, -3.4028235e+38  ;;  %v399_v61 = vmin.f32 %v395_v54, %v396_v55 }
  0xf8   : > { %v393_v52 = vsel %vm385_vm7, %v900_v27, 3.4028235e+38  ;;  %v398_v57 = vmin.f32 %v390_v49, %v394_v53  ;;  %v414_v2 = vsel %vm385_vm7, %v900_v27, -3.4028235e+38  ;;  %v415_v3 = vsel %vm386_vm8, %v896_v23, -3.4028235e+38 }
  0xf9   : > { %v397_v56 = vmin.f32 %v389_v48, %v393_v52  ;;  %v416_v4 = vmax.f32 %v408_v58, %v412_v63  ;;  %v417_v5 = vmax.f32 %v409_v59, %v413_v0  ;;  %v418_v6 = vmax.f32 %v410_v60, %v414_v2 }
  0xfa   : > { %v419_v7 = vmax.f32 %v411_v62, %v415_v3 }
  0xfb   : > { %v400_v1 = vmin.f32 %v397_v56, %v398_v57  ;;  %v420_v9 = vmax.f32 %v416_v4, %v417_v5 }
  0xfc   : > { %v421_v10 = vmax.f32 %v418_v6, %v419_v7 }
  0xfd   : > { %v401_v8 = vmin.f32 %v399_v61, %v400_v1 }
  0xfe   : > { %v422_v12 = vmax.f32 %v420_v9, %v421_v10 }
  0xff   : > { %v402_v11 = vrot.slane %v401_v8, 4 }
 0x100   : > { %v423_v16 = vrot.slane %v422_v12, 4 }
 0x101   : > { %v403_v13 = vmin.f32 %v401_v8, %v402_v11 }
 0x102   : > { %v424_v20 = vmax.f32 %v422_v12, %v423_v16 }
 0x103   : > { %v404_v17 = vrot.slane %v403_v13, 2 }
 0x104   : > { %v425_v24 = vrot.slane %v424_v20, 2 }
 0x105   : > { %v405_v21 = vmin.f32 %v403_v13, %v404_v17 }
 0x106   : > { %v426_v28 = vmax.f32 %v424_v20, %v425_v24 }
 0x107   : > { %v406_v25 = vrot.slane %v405_v21, 1 }
 0x108   : > { %v427_v30 = vrot.slane %v426_v28, 1 }
 0x109   : > { %v407_v29 = vmin.f32 %v405_v21, %v406_v25 }
 0x10a   : > { %v428_v31 = vmax.f32 %v426_v28, %v427_v30 }
 0x10b   : > { %429 = vst [vmem:[%s904_s14] sm:$0xff] %v407_v29 }
 0x10c   : > { %430 = vst [vmem:[%s908_s20] sm:$0xff] %v428_v31 }
 0x10d PF: > { %434 = sbr.rel (%p107_p2) target bundleno = 289 (0x121), region = 40  ;;  %v435_v32 = vmin.f32 (!%p107_p2), %v890_v18, %v892_v19  ;;  %v436_v33 = vmin.f32 (!%p107_p2), %v886_v14, %v888_v15  ;;  %v437_v34 = vmin.f32 (!%p107_p2), %v898_v26, %v900_v27  ;;  %v438_v35 = vmin.f32 (!%p107_p2), %v894_v22, %v896_v23 }
 0x10e   : > { %v448_v36 = vmax.f32 (!%p107_p2), %v890_v18, %v892_v19  ;;  %v449_v37 = vmax.f32 (!%p107_p2), %v886_v14, %v888_v15  ;;  %v450_v38 = vmax.f32 (!%p107_p2), %v898_v26, %v900_v27  ;;  %v451_v39 = vmax.f32 (!%p107_p2), %v894_v22, %v896_v23 }
 0x10f   : > { %v439_v40 = vmin.f32 (!%p107_p2), %v435_v32, %v436_v33  ;;  %v440_v41 = vmin.f32 (!%p107_p2), %v437_v34, %v438_v35 }
 0x110   : > { %v452_v42 = vmax.f32 (!%p107_p2), %v448_v36, %v449_v37  ;;  %v453_v43 = vmax.f32 (!%p107_p2), %v450_v38, %v451_v39 }
 0x111   : > { %v441_v44 = vmin.f32 (!%p107_p2), %v439_v40, %v440_v41 }
 0x112   : > { %v454_v45 = vmax.f32 (!%p107_p2), %v452_v42, %v453_v43 }
 0x113   : > { %v442_v46 = vrot.slane (!%p107_p2), %v441_v44, 4 }
 0x114   : > { %v455_v47 = vrot.slane %v454_v45, 4 }
 0x115   : > { %v443_v18 = vmin.f32 %v441_v44, %v442_v46 }
 0x116   : > { %v456_v19 = vmax.f32 %v454_v45, %v455_v47 }
 0x117   : > { %v444_v48 = vrot.slane %v443_v18, 2 }
 0x118   : > { %v457_v14 = vrot.slane %v456_v19, 2 }
 0x119   : > { %v445_v15 = vmin.f32 %v443_v18, %v444_v48 }
 0x11a   : > { %v458_v49 = vmax.f32 %v456_v19, %v457_v14 }
 0x11b   : > { %v446_v26 = vrot.slane %v445_v15, 1 }
 0x11c   : > { %v459_v27 = vrot.slane %v458_v49, 1 }
 0x11d   : > { %v447_v50 = vmin.f32 %v445_v15, %v446_v26 }
 0x11e   : > { %v460_v22 = vmax.f32 %v458_v49, %v459_v27 }
 0x11f   : > { %461 = vst [vmem:[%s904_s14] sm:$0xff] %v447_v50 }
 0x120   : > { %462 = vst [vmem:[%s908_s20] sm:$0xff] %v460_v22 }
 0x121 PF: > { %s608_s23 = sshll.u32 %s832_s19, 7  ;;  %s482_s5 = sshll.u32 %s904_s14, 4  ;;  %s483_s5 = int_to_ptr.vmem [resolvable:$true] %s482_s5 }
 0x122   : > { %s972_s30 = scalar_lea.hbm %s1039_s3, %s608_s23  ;;  %s464_s6 = scalar_lea.sflag [#allocation3], %s862_s27 }
 0x123   : > { %s688_s7 = scalar_lea.vmem %s483_s5, 128  ;;  %s784_s8 = smov [#allocation2]  }
 0x124   : > { %p689_p12 = scmp.ne.s32.totalorder %s483_s5, %s688_s7  ;;  %s692_s9 = sshll.u32 %s784_s8, 4  ;;  %s693_s9 = int_to_ptr.vmem [resolvable:$false] %s692_s9 }
 0x125   : > { %s694_s10 = scalar_lea.vmem %s693_s9, 256  ;;  %p695_p1 = scmp.lt.s32.totalorder %s483_s5, %s693_s9 }
 0x126   : > { %p690_p13 = pnand %p689_p12, %p851_p5  ;;  %p696_p2 = scmp.lt.s32.totalorder %s694_s10, %s688_s7 }
 0x128   : > { %p691_p0 = pneg %p690_p13  ;;  %p697_p3 = por %p696_p2, %p695_p1 }
 0x12a   : > { %p698_p4 = pnand %p697_p3, %p691_p0 }
 0x12c   : > { %701 = shalt.err (!%p698_p4)
}
 0x12d   : > { %s702_s11 = scalar_lea.hbm %s972_s30, 128  ;;  %s706_s14 = scalar_lea.hbm %s1039_s3, 512 }
 0x12e   : > { %p703_p7 = scmp.ne.s32.totalorder %s972_s30, %s702_s11  ;;  %p707_p10 = scmp.lt.u32.totalorder %s972_s30, %s1039_s3 }
 0x12f   : > { %p708_p11 = scmp.lt.u32.totalorder %s706_s14, %s702_s11  ;;  %p710_p13 = scmp.lt.u32.totalorder %s702_s11, %s972_s30 }
 0x130   : > { %p704_p8 = pnand %p703_p7, %p851_p5 }
 0x131   : > { %p709_p12 = por %p708_p11, %p707_p10 }
 0x132   : > { %p705_p9 = pneg %p704_p8 }
 0x133   : > { %p711_p0 = por %p710_p13, %p709_p12 }
 0x135   : > { %p712_p1 = pnand %p711_p0, %p705_p9 }
 0x137   : > { %715 = shalt.err (!%p712_p1)
}
 0x138   : > { %644 = dma.vmem_to_hbm [thread:$0]  (%p851_p5), %s483_s5, 128, %s972_s30, %s464_s6  }
 0x139   : > { %s998_s8 = scalar_lea.hbm %s1040_s4, %s608_s23  ;;  %s495_s9 = sshll.u32 %s908_s20, 4  ;;  %s496_s9 = int_to_ptr.vmem [resolvable:$true] %s495_s9 }
 0x13a   : > { %s469_s10 = scalar_lea.sflag [#allocation5], %s862_s27  ;;  %s716_s11 = scalar_lea.vmem %s496_s9, 128 }
 0x13b   : > { %p717_p2 = scmp.ne.s32.totalorder %s496_s9, %s716_s11  ;;  %s785_s12 = smov [#allocation4]  }
 0x13c   : > { %s720_s13 = sshll.u32 %s785_s12, 4  ;;  %s721_s13 = int_to_ptr.vmem [resolvable:$false] %s720_s13 }
 0x13d   : > { %p718_p3 = pnand %p717_p2, %p851_p5  ;;  %s722_s14 = scalar_lea.vmem %s721_s13, 256 }
 0x13e   : > { %p723_p7 = scmp.lt.s32.totalorder %s496_s9, %s721_s13  ;;  %p724_p8 = scmp.lt.s32.totalorder %s722_s14, %s716_s11 }
 0x13f   : > { %p719_p4 = pneg %p718_p3 }
 0x140   : > { %p725_p9 = por %p724_p8, %p723_p7 }
 0x142   : > { %p726_p10 = pnand %p725_p9, %p719_p4 }
 0x144   : > { %729 = shalt.err (!%p726_p10)
}
 0x145   : > { %s730_s19 = scalar_lea.hbm %s998_s8, 128  ;;  %s734_s23 = scalar_lea.hbm %s1040_s4, 512 }
 0x146   : > { %p731_p11 = scmp.ne.s32.totalorder %s998_s8, %s730_s19  ;;  %p735_p0 = scmp.lt.u32.totalorder %s998_s8, %s1040_s4 }
 0x147   : > { %p736_p1 = scmp.lt.u32.totalorder %s734_s23, %s730_s19  ;;  %p738_p3 = scmp.lt.u32.totalorder %s730_s19, %s998_s8 }
 0x148   : > { %p732_p12 = pnand %p731_p11, %p851_p5 }
 0x149   : > { %p737_p2 = por %p736_p1, %p735_p0 }
 0x14a   : > { %p733_p13 = pneg %p732_p12 }
 0x14b   : > { %p739_p4 = por %p738_p3, %p737_p2 }
 0x14d   : > { %p740_p7 = pnand %p739_p4, %p733_p13 }
 0x14f   : > { %743 = shalt.err (!%p740_p7)
}
 0x150   : > { %645 = dma.vmem_to_hbm [thread:$0]  (%p851_p5), %s496_s9, 128, %s998_s8, %s469_s10  }
 0x151 PF: > { %p655_p8 = scmp.ge.s32.totalorder %s782_s18, 2  ;;  %s507_s6 = sand.u32 1, %s770_s15  }
 0x152   : > { %s508_s22 = scalar_lea.sflag [#allocation3], %s507_s6 }
 0x153   : > { %p649_p9 = pnand %p655_p8, %p855_p6 }
 0x155   : > { %761 = dma.done.wait (!%p649_p9), %s508_s22, 128  }
 0x156   : > { %763 = vsyncadd (!%p649_p9), %s508_s22, 4294967168  ;;  %s517_s28 = scalar_lea.sflag [#allocation5], %s507_s6 }
 0x157   : > { %765 = dma.done.wait (!%p649_p9), %s517_s28, 128  }
 0x158   : > { %767 = vsyncadd (!%p649_p9), %s517_s28, 4294967168  ;;  %p18_p5 = scmp.ge.s32.totalorder %s836_s21, 6   ;;  %s1043_s15 = smov %s774_s16 }
 0x159   : > { %s1044_s16 = smov %s778_s17  ;;  %s1045_s17 = smov %s847_s24 }
 0x15a   : > { %s1046_s18 = smov %s836_s21  ;;  %20 = sbr.rel (!%p18_p5) target bundleno = 5 (0x5), region = 92 }
 0x161   :  { %522 = vsyncpa [#allocation3], 1 }
 0x162   :  { %524 = vsyncpa [#allocation3 + $0x1], 1 }
 0x163   :  { %525 = vsyncpa [#allocation5], 1 }
 0x164   :  { %527 = vsyncpa [#allocation5 + $0x1], 1 }

</bundles_post_ra>
